<compile_context>
chip_gen: v7x
topology: tpu7x:2x2x1
jax: 0.10.0
libtpu: 0.0.40
codegen_flags: <defaults>
</compile_context>

<pallas_src>
import jax
import jax.numpy as jnp
from jax import lax
from jax.experimental import pallas as pl
from jax.experimental.pallas import tpu as pltpu


def lstm_cls_kernel(x_ref, w_ih_ref, w_hh_ref, b_ref, w_c_ref, b_c_ref,
                    out_ref):
    seq_len = x_ref.shape[0]
    H = w_hh_ref.shape[0]           # hidden dim

    # --- Hoisted work (off the serial critical path) -------------------------
    # Input projection for every timestep at once, bias folded in:
    # (seq, D) @ (D, 4H) + (1, 4H) -> (seq, 4H).  For seq=8, 4H=128 this is
    # exactly one f32 vreg.
    xw = (jnp.dot(x_ref[...], w_ih_ref[...],
                  preferred_element_type=jnp.float32) + b_ref[...])

    # Recurrent weights loaded once, kept as a value across all steps.
    w_hh = w_hh_ref[...]

    # --- Serial recurrence: h/c carried as vregs, loop fully unrolled --------
    h = jnp.zeros((1, H), jnp.float32)
    c = jnp.zeros((1, H), jnp.float32)

    for t in range(seq_len):                       # static trip count -> unrolled
        pre = (jnp.dot(h, w_hh, preferred_element_type=jnp.float32)
               + xw[t:t + 1, :])                   # (1, 4H)
        # Slice into the gate bands first, then activate each band: 4 short
        # EUP ops (sigmoid x3 + tanh x1) instead of two full-4H transcendentals
        # plus a lane-mask select.
        i_g = jax.nn.sigmoid(pre[:, 0:H])
        f_g = jax.nn.sigmoid(pre[:, H:2 * H])
        g_g = jnp.tanh(pre[:, 2 * H:3 * H])
        o_g = jax.nn.sigmoid(pre[:, 3 * H:4 * H])
        c = f_g * c + i_g * g_g
        h = o_g * jnp.tanh(c)

    # --- hidden2class + log_softmax(dim=1), fused in-kernel -------------------
    logits = (jnp.dot(h, w_c_ref[...],
                      preferred_element_type=jnp.float32) + b_c_ref[...])
    m = jnp.max(logits, axis=1, keepdims=True)
    shifted = logits - m
    lse = jnp.log(jnp.sum(jnp.exp(shifted), axis=1, keepdims=True))
    out_ref[...] = shifted - lse


def lstm_mvts_lrn(x, w_ih_flat, w_hh_flat, b_flat, w_c, b_c):
    """Pallas wrapper: everything lands in VMEM as one block (single grid step)."""
    num_classes = w_c.shape[-1]
    return pl.pallas_call(
        lstm_cls_kernel,
        out_shape=jax.ShapeDtypeStruct((1, num_classes), jnp.float32),
        grid_spec=pltpu.PrefetchScalarGridSpec(
            num_scalar_prefetch=0,
            grid=(1,),
            in_specs=[
                pl.BlockSpec(x.shape, lambda i: (0, 0)),
                pl.BlockSpec(w_ih_flat.shape, lambda i: (0, 0)),
                pl.BlockSpec(w_hh_flat.shape, lambda i: (0, 0)),
                pl.BlockSpec(b_flat.shape, lambda i: (0, 0)),
                pl.BlockSpec(w_c.shape, lambda i: (0, 0)),
                pl.BlockSpec(b_c.shape, lambda i: (0, 0)),
            ],
            out_specs=pl.BlockSpec((1, num_classes), lambda i: (0, 0)),
        ),
        compiler_params=pltpu.CompilerParams(
            dimension_semantics=("arbitrary",)),
    )(x, w_ih_flat, w_hh_flat, b_flat, w_c, b_c)


def reference_forward(x, w_ih_flat, w_hh_flat, b_flat, w_c, b_c):
    """Pure-JAX reference (same math as nn.LSTM + Linear + log_softmax)."""
    H = w_hh_flat.shape[0]
    h = jnp.zeros((1, H), jnp.float32)
    c = jnp.zeros((1, H), jnp.float32)

    def step(carry, x_t):
        h, c = carry
        pre = x_t[None, :] @ w_ih_flat + h @ w_hh_flat + b_flat
        i_g = jax.nn.sigmoid(pre[:, 0:H])
        f_g = jax.nn.sigmoid(pre[:, H:2 * H])
        g_g = jnp.tanh(pre[:, 2 * H:3 * H])
        o_g = jax.nn.sigmoid(pre[:, 3 * H:4 * H])
        c = f_g * c + i_g * g_g
        h = o_g * jnp.tanh(c)
        return (h, c), None

    (h, _), _ = lax.scan(step, (h, c), x)
    logits = h @ w_c + b_c
    return jax.nn.log_softmax(logits, axis=1)


if __name__ == "__main__":
    seq_len, input_dim, hidden_dim, num_classes = 8, 16, 32, 4

    key = jax.random.PRNGKey(0)
    k_x, k_wih, k_whh, k_bih, k_bhh, k_wc, k_bc = jax.random.split(key, 7)

    # Deterministic synthetic params, PyTorch-style uniform(-1/sqrt(H), 1/sqrt(H)).
    bound = 1.0 / jnp.sqrt(jnp.float32(hidden_dim))

    # Generate in PyTorch layout (gate order i, f, g, o along the 4H rows).
    weight_ih = jax.random.uniform(k_wih, (4 * hidden_dim, input_dim),
                                   jnp.float32, -bound, bound)
    weight_hh = jax.random.uniform(k_whh, (4 * hidden_dim, hidden_dim),
                                   jnp.float32, -bound, bound)
    bias_ih = jax.random.uniform(k_bih, (4 * hidden_dim,), jnp.float32, -bound, bound)
    bias_hh = jax.random.uniform(k_bhh, (4 * hidden_dim,), jnp.float32, -bound, bound)
    cls_weight = jax.random.uniform(k_wc, (num_classes, hidden_dim),
                                    jnp.float32, -bound, bound)
    cls_bias = jax.random.uniform(k_bc, (num_classes,), jnp.float32, -bound, bound)

    # Convert to fused, lane-dense kernel layout.
    w_ih_flat = weight_ih.T                                    # (D, 4H) = (16, 128)
    w_hh_flat = weight_hh.T                                    # (H, 4H) = (32, 128)
    b_flat = (bias_ih + bias_hh).reshape(1, 4 * hidden_dim)    # (1, 4H)
    w_c = cls_weight.T                                         # (H, C)
    b_c = cls_bias.reshape(1, num_classes)                     # (1, C)

    # Input mvts: (seq_len, input_dim); PyTorch views it as (seq, 1, D).
    x = jax.random.normal(k_x, (seq_len, input_dim), jnp.float32)

    out = lstm_mvts_lrn(x, w_ih_flat, w_hh_flat, b_flat, w_c, b_c)
    out = jax.block_until_ready(out)

    ref = reference_forward(x, w_ih_flat, w_hh_flat, b_flat, w_c, b_c)
    assert out.shape == (1, num_classes)
    assert jnp.allclose(out, ref, atol=1e-5, rtol=1e-5), (out, ref)

    print("KERNEL_OK")
</pallas_src>

<mosaic_0001>
module attributes {stable_mosaic.version = 11 : i64} {
  func.func @lstm_cls_kernel(%arg0: i32, %arg1: memref<8x16xf32, #tpu.memory_space<vmem>>, %arg2: memref<16x128xf32, #tpu.memory_space<vmem>>, %arg3: memref<32x128xf32, #tpu.memory_space<vmem>>, %arg4: memref<1x128xf32, #tpu.memory_space<vmem>>, %arg5: memref<32x4xf32, #tpu.memory_space<vmem>>, %arg6: memref<1x4xf32, #tpu.memory_space<vmem>>, %arg7: memref<1x4xf32, #tpu.memory_space<vmem>>) attributes {dimension_semantics = [#tpu.dimension_semantics<arbitrary>], iteration_bounds = array<i64: 1>, scalar_prefetch = 0 : i64, scratch_operands = 0 : i64, tpu.core_type = #tpu.core_type<tc>, window_params = [{pipeline_mode = #tpu.pipeline_mode<synchronous>, transform_indices = @transform_0, window_bounds = array<i64: 8, 16>}, {pipeline_mode = #tpu.pipeline_mode<synchronous>, transform_indices = @transform_1, window_bounds = array<i64: 16, 128>}, {pipeline_mode = #tpu.pipeline_mode<synchronous>, transform_indices = @transform_2, window_bounds = array<i64: 32, 128>}, {pipeline_mode = #tpu.pipeline_mode<synchronous>, transform_indices = @transform_3, window_bounds = array<i64: 1, 128>}, {pipeline_mode = #tpu.pipeline_mode<synchronous>, transform_indices = @transform_4, window_bounds = array<i64: 32, 4>}, {pipeline_mode = #tpu.pipeline_mode<synchronous>, transform_indices = @transform_5, window_bounds = array<i64: 1, 4>}, {pipeline_mode = #tpu.pipeline_mode<synchronous>, transform_indices = @transform_6, window_bounds = array<i64: 1, 4>}]} {
    %c0 = arith.constant 0 : index
    %c0_0 = arith.constant 0 : index
    %0 = vector.load %arg1[%c0, %c0_0] : memref<8x16xf32, #tpu.memory_space<vmem>>, vector<8x16xf32>
    %c0_1 = arith.constant 0 : index
    %c0_2 = arith.constant 0 : index
    %1 = vector.load %arg2[%c0_1, %c0_2] : memref<16x128xf32, #tpu.memory_space<vmem>>, vector<16x128xf32>
    %cst = arith.constant dense<0.000000e+00> : vector<8x128xf32>
    %2 = tpu.matmul %0, %1, %cst {dimension_numbers = #tpu.dot_dimension_numbers<[1], [0], [0], [1], [0, 0, 1, 1], [], []>} : vector<8x16xf32>, vector<16x128xf32>, vector<8x128xf32> -> vector<8x128xf32>
    %c0_3 = arith.constant 0 : index
    %c0_4 = arith.constant 0 : index
    %3 = vector.load %arg4[%c0_3, %c0_4] : memref<1x128xf32, #tpu.memory_space<vmem>>, vector<1x128xf32>
    %4 = vector.broadcast %3 : vector<1x128xf32> to vector<8x128xf32>
    %5 = arith.addf %2, %4 : vector<8x128xf32>
    %c0_5 = arith.constant 0 : index
    %c0_6 = arith.constant 0 : index
    %6 = vector.load %arg3[%c0_5, %c0_6] : memref<32x128xf32, #tpu.memory_space<vmem>>, vector<32x128xf32>
    %cst_7 = arith.constant 0.000000e+00 : f32
    %7 = vector.broadcast %cst_7 : f32 to vector<1x32xf32>
    %cst_8 = arith.constant 0.000000e+00 : f32
    %8 = vector.broadcast %cst_8 : f32 to vector<1x32xf32>
    %cst_9 = arith.constant dense<0.000000e+00> : vector<1x128xf32>
    %9 = tpu.matmul %7, %6, %cst_9 {dimension_numbers = #tpu.dot_dimension_numbers<[1], [0], [0], [1], [0, 0, 1, 1], [], []>} : vector<1x32xf32>, vector<32x128xf32>, vector<1x128xf32> -> vector<1x128xf32>
    %10 = vector.extract_strided_slice %5 {offsets = [0, 0], sizes = [1, 128], strides = [1, 1]} : vector<8x128xf32> to vector<1x128xf32>
    %11 = arith.addf %9, %10 : vector<1x128xf32>
    %12 = vector.extract_strided_slice %11 {offsets = [0, 0], sizes = [1, 32], strides = [1, 1]} : vector<1x128xf32> to vector<1x32xf32>
    %13 = arith.negf %12 : vector<1x32xf32>
    %14 = math.exp %13 : vector<1x32xf32>
    %cst_10 = arith.constant 1.000000e+00 : f32
    %15 = vector.broadcast %cst_10 : f32 to vector<1x32xf32>
    %16 = arith.addf %15, %14 : vector<1x32xf32>
    %17 = arith.divf %15, %16 : vector<1x32xf32>
    %18 = vector.extract_strided_slice %11 {offsets = [0, 32], sizes = [1, 32], strides = [1, 1]} : vector<1x128xf32> to vector<1x32xf32>
    %19 = arith.negf %18 : vector<1x32xf32>
    %20 = math.exp %19 : vector<1x32xf32>
    %cst_11 = arith.constant 1.000000e+00 : f32
    %21 = vector.broadcast %cst_11 : f32 to vector<1x32xf32>
    %22 = arith.addf %21, %20 : vector<1x32xf32>
    %23 = arith.divf %21, %22 : vector<1x32xf32>
    %24 = vector.extract_strided_slice %11 {offsets = [0, 64], sizes = [1, 32], strides = [1, 1]} : vector<1x128xf32> to vector<1x32xf32>
    %25 = math.tanh %24 : vector<1x32xf32>
    %26 = vector.extract_strided_slice %11 {offsets = [0, 96], sizes = [1, 32], strides = [1, 1]} : vector<1x128xf32> to vector<1x32xf32>
    %27 = arith.negf %26 : vector<1x32xf32>
    %28 = math.exp %27 : vector<1x32xf32>
    %cst_12 = arith.constant 1.000000e+00 : f32
    %29 = vector.broadcast %cst_12 : f32 to vector<1x32xf32>
    %30 = arith.addf %29, %28 : vector<1x32xf32>
    %31 = arith.divf %29, %30 : vector<1x32xf32>
    %32 = arith.mulf %23, %8 : vector<1x32xf32>
    %33 = arith.mulf %17, %25 : vector<1x32xf32>
    %34 = arith.addf %32, %33 : vector<1x32xf32>
    %35 = math.tanh %34 : vector<1x32xf32>
    %36 = arith.mulf %31, %35 : vector<1x32xf32>
    %cst_13 = arith.constant dense<0.000000e+00> : vector<1x128xf32>
    %37 = tpu.matmul %36, %6, %cst_13 {dimension_numbers = #tpu.dot_dimension_numbers<[1], [0], [0], [1], [0, 0, 1, 1], [], []>} : vector<1x32xf32>, vector<32x128xf32>, vector<1x128xf32> -> vector<1x128xf32>
    %38 = vector.extract_strided_slice %5 {offsets = [1, 0], sizes = [1, 128], strides = [1, 1]} : vector<8x128xf32> to vector<1x128xf32>
    %39 = arith.addf %37, %38 : vector<1x128xf32>
    %40 = vector.extract_strided_slice %39 {offsets = [0, 0], sizes = [1, 32], strides = [1, 1]} : vector<1x128xf32> to vector<1x32xf32>
    %41 = arith.negf %40 : vector<1x32xf32>
    %42 = math.exp %41 : vector<1x32xf32>
    %cst_14 = arith.constant 1.000000e+00 : f32
    %43 = vector.broadcast %cst_14 : f32 to vector<1x32xf32>
    %44 = arith.addf %43, %42 : vector<1x32xf32>
    %45 = arith.divf %43, %44 : vector<1x32xf32>
    %46 = vector.extract_strided_slice %39 {offsets = [0, 32], sizes = [1, 32], strides = [1, 1]} : vector<1x128xf32> to vector<1x32xf32>
    %47 = arith.negf %46 : vector<1x32xf32>
    %48 = math.exp %47 : vector<1x32xf32>
    %cst_15 = arith.constant 1.000000e+00 : f32
    %49 = vector.broadcast %cst_15 : f32 to vector<1x32xf32>
    %50 = arith.addf %49, %48 : vector<1x32xf32>
    %51 = arith.divf %49, %50 : vector<1x32xf32>
    %52 = vector.extract_strided_slice %39 {offsets = [0, 64], sizes = [1, 32], strides = [1, 1]} : vector<1x128xf32> to vector<1x32xf32>
    %53 = math.tanh %52 : vector<1x32xf32>
    %54 = vector.extract_strided_slice %39 {offsets = [0, 96], sizes = [1, 32], strides = [1, 1]} : vector<1x128xf32> to vector<1x32xf32>
    %55 = arith.negf %54 : vector<1x32xf32>
    %56 = math.exp %55 : vector<1x32xf32>
    %cst_16 = arith.constant 1.000000e+00 : f32
    %57 = vector.broadcast %cst_16 : f32 to vector<1x32xf32>
    %58 = arith.addf %57, %56 : vector<1x32xf32>
    %59 = arith.divf %57, %58 : vector<1x32xf32>
    %60 = arith.mulf %51, %34 : vector<1x32xf32>
    %61 = arith.mulf %45, %53 : vector<1x32xf32>
    %62 = arith.addf %60, %61 : vector<1x32xf32>
    %63 = math.tanh %62 : vector<1x32xf32>
    %64 = arith.mulf %59, %63 : vector<1x32xf32>
    %cst_17 = arith.constant dense<0.000000e+00> : vector<1x128xf32>
    %65 = tpu.matmul %64, %6, %cst_17 {dimension_numbers = #tpu.dot_dimension_numbers<[1], [0], [0], [1], [0, 0, 1, 1], [], []>} : vector<1x32xf32>, vector<32x128xf32>, vector<1x128xf32> -> vector<1x128xf32>
    %66 = vector.extract_strided_slice %5 {offsets = [2, 0], sizes = [1, 128], strides = [1, 1]} : vector<8x128xf32> to vector<1x128xf32>
    %67 = arith.addf %65, %66 : vector<1x128xf32>
    %68 = vector.extract_strided_slice %67 {offsets = [0, 0], sizes = [1, 32], strides = [1, 1]} : vector<1x128xf32> to vector<1x32xf32>
    %69 = arith.negf %68 : vector<1x32xf32>
    %70 = math.exp %69 : vector<1x32xf32>
    %cst_18 = arith.constant 1.000000e+00 : f32
    %71 = vector.broadcast %cst_18 : f32 to vector<1x32xf32>
    %72 = arith.addf %71, %70 : vector<1x32xf32>
    %73 = arith.divf %71, %72 : vector<1x32xf32>
    %74 = vector.extract_strided_slice %67 {offsets = [0, 32], sizes = [1, 32], strides = [1, 1]} : vector<1x128xf32> to vector<1x32xf32>
    %75 = arith.negf %74 : vector<1x32xf32>
    %76 = math.exp %75 : vector<1x32xf32>
    %cst_19 = arith.constant 1.000000e+00 : f32
    %77 = vector.broadcast %cst_19 : f32 to vector<1x32xf32>
    %78 = arith.addf %77, %76 : vector<1x32xf32>
    %79 = arith.divf %77, %78 : vector<1x32xf32>
    %80 = vector.extract_strided_slice %67 {offsets = [0, 64], sizes = [1, 32], strides = [1, 1]} : vector<1x128xf32> to vector<1x32xf32>
    %81 = math.tanh %80 : vector<1x32xf32>
    %82 = vector.extract_strided_slice %67 {offsets = [0, 96], sizes = [1, 32], strides = [1, 1]} : vector<1x128xf32> to vector<1x32xf32>
    %83 = arith.negf %82 : vector<1x32xf32>
    %84 = math.exp %83 : vector<1x32xf32>
    %cst_20 = arith.constant 1.000000e+00 : f32
    %85 = vector.broadcast %cst_20 : f32 to vector<1x32xf32>
    %86 = arith.addf %85, %84 : vector<1x32xf32>
    %87 = arith.divf %85, %86 : vector<1x32xf32>
    %88 = arith.mulf %79, %62 : vector<1x32xf32>
    %89 = arith.mulf %73, %81 : vector<1x32xf32>
    %90 = arith.addf %88, %89 : vector<1x32xf32>
    %91 = math.tanh %90 : vector<1x32xf32>
    %92 = arith.mulf %87, %91 : vector<1x32xf32>
    %cst_21 = arith.constant dense<0.000000e+00> : vector<1x128xf32>
    %93 = tpu.matmul %92, %6, %cst_21 {dimension_numbers = #tpu.dot_dimension_numbers<[1], [0], [0], [1], [0, 0, 1, 1], [], []>} : vector<1x32xf32>, vector<32x128xf32>, vector<1x128xf32> -> vector<1x128xf32>
    %94 = vector.extract_strided_slice %5 {offsets = [3, 0], sizes = [1, 128], strides = [1, 1]} : vector<8x128xf32> to vector<1x128xf32>
    %95 = arith.addf %93, %94 : vector<1x128xf32>
    %96 = vector.extract_strided_slice %95 {offsets = [0, 0], sizes = [1, 32], strides = [1, 1]} : vector<1x128xf32> to vector<1x32xf32>
    %97 = arith.negf %96 : vector<1x32xf32>
    %98 = math.exp %97 : vector<1x32xf32>
    %cst_22 = arith.constant 1.000000e+00 : f32
    %99 = vector.broadcast %cst_22 : f32 to vector<1x32xf32>
    %100 = arith.addf %99, %98 : vector<1x32xf32>
    %101 = arith.divf %99, %100 : vector<1x32xf32>
    %102 = vector.extract_strided_slice %95 {offsets = [0, 32], sizes = [1, 32], strides = [1, 1]} : vector<1x128xf32> to vector<1x32xf32>
    %103 = arith.negf %102 : vector<1x32xf32>
    %104 = math.exp %103 : vector<1x32xf32>
    %cst_23 = arith.constant 1.000000e+00 : f32
    %105 = vector.broadcast %cst_23 : f32 to vector<1x32xf32>
    %106 = arith.addf %105, %104 : vector<1x32xf32>
    %107 = arith.divf %105, %106 : vector<1x32xf32>
    %108 = vector.extract_strided_slice %95 {offsets = [0, 64], sizes = [1, 32], strides = [1, 1]} : vector<1x128xf32> to vector<1x32xf32>
    %109 = math.tanh %108 : vector<1x32xf32>
    %110 = vector.extract_strided_slice %95 {offsets = [0, 96], sizes = [1, 32], strides = [1, 1]} : vector<1x128xf32> to vector<1x32xf32>
    %111 = arith.negf %110 : vector<1x32xf32>
    %112 = math.exp %111 : vector<1x32xf32>
    %cst_24 = arith.constant 1.000000e+00 : f32
    %113 = vector.broadcast %cst_24 : f32 to vector<1x32xf32>
    %114 = arith.addf %113, %112 : vector<1x32xf32>
    %115 = arith.divf %113, %114 : vector<1x32xf32>
    %116 = arith.mulf %107, %90 : vector<1x32xf32>
    %117 = arith.mulf %101, %109 : vector<1x32xf32>
    %118 = arith.addf %116, %117 : vector<1x32xf32>
    %119 = math.tanh %118 : vector<1x32xf32>
    %120 = arith.mulf %115, %119 : vector<1x32xf32>
    %cst_25 = arith.constant dense<0.000000e+00> : vector<1x128xf32>
    %121 = tpu.matmul %120, %6, %cst_25 {dimension_numbers = #tpu.dot_dimension_numbers<[1], [0], [0], [1], [0, 0, 1, 1], [], []>} : vector<1x32xf32>, vector<32x128xf32>, vector<1x128xf32> -> vector<1x128xf32>
    %122 = vector.extract_strided_slice %5 {offsets = [4, 0], sizes = [1, 128], strides = [1, 1]} : vector<8x128xf32> to vector<1x128xf32>
    %123 = arith.addf %121, %122 : vector<1x128xf32>
    %124 = vector.extract_strided_slice %123 {offsets = [0, 0], sizes = [1, 32], strides = [1, 1]} : vector<1x128xf32> to vector<1x32xf32>
    %125 = arith.negf %124 : vector<1x32xf32>
    %126 = math.exp %125 : vector<1x32xf32>
    %cst_26 = arith.constant 1.000000e+00 : f32
    %127 = vector.broadcast %cst_26 : f32 to vector<1x32xf32>
    %128 = arith.addf %127, %126 : vector<1x32xf32>
    %129 = arith.divf %127, %128 : vector<1x32xf32>
    %130 = vector.extract_strided_slice %123 {offsets = [0, 32], sizes = [1, 32], strides = [1, 1]} : vector<1x128xf32> to vector<1x32xf32>
    %131 = arith.negf %130 : vector<1x32xf32>
    %132 = math.exp %131 : vector<1x32xf32>
    %cst_27 = arith.constant 1.000000e+00 : f32
    %133 = vector.broadcast %cst_27 : f32 to vector<1x32xf32>
    %134 = arith.addf %133, %132 : vector<1x32xf32>
    %135 = arith.divf %133, %134 : vector<1x32xf32>
    %136 = vector.extract_strided_slice %123 {offsets = [0, 64], sizes = [1, 32], strides = [1, 1]} : vector<1x128xf32> to vector<1x32xf32>
    %137 = math.tanh %136 : vector<1x32xf32>
    %138 = vector.extract_strided_slice %123 {offsets = [0, 96], sizes = [1, 32], strides = [1, 1]} : vector<1x128xf32> to vector<1x32xf32>
    %139 = arith.negf %138 : vector<1x32xf32>
    %140 = math.exp %139 : vector<1x32xf32>
    %cst_28 = arith.constant 1.000000e+00 : f32
    %141 = vector.broadcast %cst_28 : f32 to vector<1x32xf32>
    %142 = arith.addf %141, %140 : vector<1x32xf32>
    %143 = arith.divf %141, %142 : vector<1x32xf32>
    %144 = arith.mulf %135, %118 : vector<1x32xf32>
    %145 = arith.mulf %129, %137 : vector<1x32xf32>
    %146 = arith.addf %144, %145 : vector<1x32xf32>
    %147 = math.tanh %146 : vector<1x32xf32>
    %148 = arith.mulf %143, %147 : vector<1x32xf32>
    %cst_29 = arith.constant dense<0.000000e+00> : vector<1x128xf32>
    %149 = tpu.matmul %148, %6, %cst_29 {dimension_numbers = #tpu.dot_dimension_numbers<[1], [0], [0], [1], [0, 0, 1, 1], [], []>} : vector<1x32xf32>, vector<32x128xf32>, vector<1x128xf32> -> vector<1x128xf32>
    %150 = vector.extract_strided_slice %5 {offsets = [5, 0], sizes = [1, 128], strides = [1, 1]} : vector<8x128xf32> to vector<1x128xf32>
    %151 = arith.addf %149, %150 : vector<1x128xf32>
    %152 = vector.extract_strided_slice %151 {offsets = [0, 0], sizes = [1, 32], strides = [1, 1]} : vector<1x128xf32> to vector<1x32xf32>
    %153 = arith.negf %152 : vector<1x32xf32>
    %154 = math.exp %153 : vector<1x32xf32>
    %cst_30 = arith.constant 1.000000e+00 : f32
    %155 = vector.broadcast %cst_30 : f32 to vector<1x32xf32>
    %156 = arith.addf %155, %154 : vector<1x32xf32>
    %157 = arith.divf %155, %156 : vector<1x32xf32>
    %158 = vector.extract_strided_slice %151 {offsets = [0, 32], sizes = [1, 32], strides = [1, 1]} : vector<1x128xf32> to vector<1x32xf32>
    %159 = arith.negf %158 : vector<1x32xf32>
    %160 = math.exp %159 : vector<1x32xf32>
    %cst_31 = arith.constant 1.000000e+00 : f32
    %161 = vector.broadcast %cst_31 : f32 to vector<1x32xf32>
    %162 = arith.addf %161, %160 : vector<1x32xf32>
    %163 = arith.divf %161, %162 : vector<1x32xf32>
    %164 = vector.extract_strided_slice %151 {offsets = [0, 64], sizes = [1, 32], strides = [1, 1]} : vector<1x128xf32> to vector<1x32xf32>
    %165 = math.tanh %164 : vector<1x32xf32>
    %166 = vector.extract_strided_slice %151 {offsets = [0, 96], sizes = [1, 32], strides = [1, 1]} : vector<1x128xf32> to vector<1x32xf32>
    %167 = arith.negf %166 : vector<1x32xf32>
    %168 = math.exp %167 : vector<1x32xf32>
    %cst_32 = arith.constant 1.000000e+00 : f32
    %169 = vector.broadcast %cst_32 : f32 to vector<1x32xf32>
    %170 = arith.addf %169, %168 : vector<1x32xf32>
    %171 = arith.divf %169, %170 : vector<1x32xf32>
    %172 = arith.mulf %163, %146 : vector<1x32xf32>
    %173 = arith.mulf %157, %165 : vector<1x32xf32>
    %174 = arith.addf %172, %173 : vector<1x32xf32>
    %175 = math.tanh %174 : vector<1x32xf32>
    %176 = arith.mulf %171, %175 : vector<1x32xf32>
    %cst_33 = arith.constant dense<0.000000e+00> : vector<1x128xf32>
    %177 = tpu.matmul %176, %6, %cst_33 {dimension_numbers = #tpu.dot_dimension_numbers<[1], [0], [0], [1], [0, 0, 1, 1], [], []>} : vector<1x32xf32>, vector<32x128xf32>, vector<1x128xf32> -> vector<1x128xf32>
    %178 = vector.extract_strided_slice %5 {offsets = [6, 0], sizes = [1, 128], strides = [1, 1]} : vector<8x128xf32> to vector<1x128xf32>
    %179 = arith.addf %177, %178 : vector<1x128xf32>
    %180 = vector.extract_strided_slice %179 {offsets = [0, 0], sizes = [1, 32], strides = [1, 1]} : vector<1x128xf32> to vector<1x32xf32>
    %181 = arith.negf %180 : vector<1x32xf32>
    %182 = math.exp %181 : vector<1x32xf32>
    %cst_34 = arith.constant 1.000000e+00 : f32
    %183 = vector.broadcast %cst_34 : f32 to vector<1x32xf32>
    %184 = arith.addf %183, %182 : vector<1x32xf32>
    %185 = arith.divf %183, %184 : vector<1x32xf32>
    %186 = vector.extract_strided_slice %179 {offsets = [0, 32], sizes = [1, 32], strides = [1, 1]} : vector<1x128xf32> to vector<1x32xf32>
    %187 = arith.negf %186 : vector<1x32xf32>
    %188 = math.exp %187 : vector<1x32xf32>
    %cst_35 = arith.constant 1.000000e+00 : f32
    %189 = vector.broadcast %cst_35 : f32 to vector<1x32xf32>
    %190 = arith.addf %189, %188 : vector<1x32xf32>
    %191 = arith.divf %189, %190 : vector<1x32xf32>
    %192 = vector.extract_strided_slice %179 {offsets = [0, 64], sizes = [1, 32], strides = [1, 1]} : vector<1x128xf32> to vector<1x32xf32>
    %193 = math.tanh %192 : vector<1x32xf32>
    %194 = vector.extract_strided_slice %179 {offsets = [0, 96], sizes = [1, 32], strides = [1, 1]} : vector<1x128xf32> to vector<1x32xf32>
    %195 = arith.negf %194 : vector<1x32xf32>
    %196 = math.exp %195 : vector<1x32xf32>
    %cst_36 = arith.constant 1.000000e+00 : f32
    %197 = vector.broadcast %cst_36 : f32 to vector<1x32xf32>
    %198 = arith.addf %197, %196 : vector<1x32xf32>
    %199 = arith.divf %197, %198 : vector<1x32xf32>
    %200 = arith.mulf %191, %174 : vector<1x32xf32>
    %201 = arith.mulf %185, %193 : vector<1x32xf32>
    %202 = arith.addf %200, %201 : vector<1x32xf32>
    %203 = math.tanh %202 : vector<1x32xf32>
    %204 = arith.mulf %199, %203 : vector<1x32xf32>
    %cst_37 = arith.constant dense<0.000000e+00> : vector<1x128xf32>
    %205 = tpu.matmul %204, %6, %cst_37 {dimension_numbers = #tpu.dot_dimension_numbers<[1], [0], [0], [1], [0, 0, 1, 1], [], []>} : vector<1x32xf32>, vector<32x128xf32>, vector<1x128xf32> -> vector<1x128xf32>
    %206 = vector.extract_strided_slice %5 {offsets = [7, 0], sizes = [1, 128], strides = [1, 1]} : vector<8x128xf32> to vector<1x128xf32>
    %207 = arith.addf %205, %206 : vector<1x128xf32>
    %208 = vector.extract_strided_slice %207 {offsets = [0, 0], sizes = [1, 32], strides = [1, 1]} : vector<1x128xf32> to vector<1x32xf32>
    %209 = arith.negf %208 : vector<1x32xf32>
    %210 = math.exp %209 : vector<1x32xf32>
    %cst_38 = arith.constant 1.000000e+00 : f32
    %211 = vector.broadcast %cst_38 : f32 to vector<1x32xf32>
    %212 = arith.addf %211, %210 : vector<1x32xf32>
    %213 = arith.divf %211, %212 : vector<1x32xf32>
    %214 = vector.extract_strided_slice %207 {offsets = [0, 32], sizes = [1, 32], strides = [1, 1]} : vector<1x128xf32> to vector<1x32xf32>
    %215 = arith.negf %214 : vector<1x32xf32>
    %216 = math.exp %215 : vector<1x32xf32>
    %cst_39 = arith.constant 1.000000e+00 : f32
    %217 = vector.broadcast %cst_39 : f32 to vector<1x32xf32>
    %218 = arith.addf %217, %216 : vector<1x32xf32>
    %219 = arith.divf %217, %218 : vector<1x32xf32>
    %220 = vector.extract_strided_slice %207 {offsets = [0, 64], sizes = [1, 32], strides = [1, 1]} : vector<1x128xf32> to vector<1x32xf32>
    %221 = math.tanh %220 : vector<1x32xf32>
    %222 = vector.extract_strided_slice %207 {offsets = [0, 96], sizes = [1, 32], strides = [1, 1]} : vector<1x128xf32> to vector<1x32xf32>
    %223 = arith.negf %222 : vector<1x32xf32>
    %224 = math.exp %223 : vector<1x32xf32>
    %cst_40 = arith.constant 1.000000e+00 : f32
    %225 = vector.broadcast %cst_40 : f32 to vector<1x32xf32>
    %226 = arith.addf %225, %224 : vector<1x32xf32>
    %227 = arith.divf %225, %226 : vector<1x32xf32>
    %228 = arith.mulf %219, %202 : vector<1x32xf32>
    %229 = arith.mulf %213, %221 : vector<1x32xf32>
    %230 = arith.addf %228, %229 : vector<1x32xf32>
    %231 = math.tanh %230 : vector<1x32xf32>
    %232 = arith.mulf %227, %231 : vector<1x32xf32>
    %c0_41 = arith.constant 0 : index
    %c0_42 = arith.constant 0 : index
    %233 = vector.load %arg5[%c0_41, %c0_42] : memref<32x4xf32, #tpu.memory_space<vmem>>, vector<32x4xf32>
    %cst_43 = arith.constant dense<0.000000e+00> : vector<1x4xf32>
    %234 = tpu.matmul %232, %233, %cst_43 {dimension_numbers = #tpu.dot_dimension_numbers<[1], [0], [0], [1], [0, 0, 1, 1], [], []>} : vector<1x32xf32>, vector<32x4xf32>, vector<1x4xf32> -> vector<1x4xf32>
    %c0_44 = arith.constant 0 : index
    %c0_45 = arith.constant 0 : index
    %235 = vector.load %arg6[%c0_44, %c0_45] : memref<1x4xf32, #tpu.memory_space<vmem>>, vector<1x4xf32>
    %236 = arith.addf %234, %235 : vector<1x4xf32>
    %cst_46 = arith.constant dense<0xFF800000> : vector<1xf32>
    %237 = vector.multi_reduction <maximumf>, %236, %cst_46 [1] : vector<1x4xf32> to vector<1xf32>
    %238 = vector.shape_cast %237 : vector<1xf32> to vector<1x1xf32>
    %239 = vector.broadcast %238 : vector<1x1xf32> to vector<1x4xf32>
    %240 = arith.subf %236, %239 : vector<1x4xf32>
    %241 = math.exp %240 : vector<1x4xf32>
    %cst_47 = arith.constant dense<0.000000e+00> : vector<1xf32>
    %242 = vector.multi_reduction <add>, %241, %cst_47 [1] : vector<1x4xf32> to vector<1xf32>
    %243 = vector.shape_cast %242 : vector<1xf32> to vector<1x1xf32>
    %244 = math.log %243 : vector<1x1xf32>
    %245 = vector.broadcast %244 : vector<1x1xf32> to vector<1x4xf32>
    %246 = arith.subf %240, %245 : vector<1x4xf32>
    %c0_48 = arith.constant 0 : index
    %c0_49 = arith.constant 0 : index
    %247 = vector.load %arg7[%c0_48, %c0_49] : memref<1x4xf32, #tpu.memory_space<vmem>>, vector<1x4xf32>
    tpu.vector_store %arg7[%c0_48, %c0_49], %246 {strides = array<i32>} : memref<1x4xf32, #tpu.memory_space<vmem>>, vector<1x4xf32>,
    return
  }
  func.func @transform_0(%arg0: i32) -> (i32, i32) {
    %c0_i32 = arith.constant 0 : i32
    %c0_i32_0 = arith.constant 0 : i32
    %c0_i32_1 = arith.constant 0 : i32
    return %c0_i32, %c0_i32_0 : i32, i32
  }
  func.func @transform_1(%arg0: i32) -> (i32, i32) {
    %c0_i32 = arith.constant 0 : i32
    %c0_i32_0 = arith.constant 0 : i32
    %c0_i32_1 = arith.constant 0 : i32
    return %c0_i32, %c0_i32_0 : i32, i32
  }
  func.func @transform_2(%arg0: i32) -> (i32, i32) {
    %c0_i32 = arith.constant 0 : i32
    %c0_i32_0 = arith.constant 0 : i32
    %c0_i32_1 = arith.constant 0 : i32
    return %c0_i32, %c0_i32_0 : i32, i32
  }
  func.func @transform_3(%arg0: i32) -> (i32, i32) {
    %c0_i32 = arith.constant 0 : i32
    %c0_i32_0 = arith.constant 0 : i32
    %c0_i32_1 = arith.constant 0 : i32
    return %c0_i32, %c0_i32_0 : i32, i32
  }
  func.func @transform_4(%arg0: i32) -> (i32, i32) {
    %c0_i32 = arith.constant 0 : i32
    %c0_i32_0 = arith.constant 0 : i32
    %c0_i32_1 = arith.constant 0 : i32
    return %c0_i32, %c0_i32_0 : i32, i32
  }
  func.func @transform_5(%arg0: i32) -> (i32, i32) {
    %c0_i32 = arith.constant 0 : i32
    %c0_i32_0 = arith.constant 0 : i32
    %c0_i32_1 = arith.constant 0 : i32
    return %c0_i32, %c0_i32_0 : i32, i32
  }
  func.func @transform_6(%arg0: i32) -> (i32, i32) {
    %c0_i32 = arith.constant 0 : i32
    %c0_i32_0 = arith.constant 0 : i32
    %c0_i32_1 = arith.constant 0 : i32
    return %c0_i32, %c0_i32_0 : i32, i32
  }
}

</mosaic_0001>

<bundles_post_ra>
// kernel: tpu_custom_call.1
= control target key start
LH: loop header
LB: loop body
LE: loop exit
PB: predicated region body
PF: predicated region fallthrough
CT: control target
= control target key end

     0   :  { %11 = vsyncpa [#allocation3], 0  ;;  %s1609_s0 = inlined_call_operand.vmem [shape: f32[8,16], index: 0, kind: input, shape index: {}]   ;;  %s1610_s1 = inlined_call_operand.hbm [shape: f32[16,128], index: 1, kind: input, shape index: {}]   ;;  %s1611_s2 = inlined_call_operand.vmem [shape: f32[32,128], index: 2, kind: input, shape index: {}]   ;;  %s1612_s3 = inlined_call_operand.vmem [shape: f32[1,128], index: 3, kind: input, shape index: {}]   ;;  %s1613_s4 = inlined_call_operand.vmem [shape: f32[32,4], index: 4, kind: input, shape index: {}]   ;;  %s1614_s5 = inlined_call_operand.vmem [shape: f32[1,4], index: 5, kind: input, shape index: {}]   ;;  %s1615_s6 = inlined_call_operand.hbm [shape: f32[1,4], index: 6, kind: output, shape index: {}]  }
   0x1   :  { %12 = vsyncpa [#allocation4], 0  ;;  %s1395_s21 = smov [#allocation2]   ;;  %s1347_s25 = scalar_lea.hbm %s1610_s1, 256 }
   0x2   :  { %s20_s22 = sshll.u32 %s1395_s21, 4  ;;  %p1348_p0 = scmp.ne.s32.totalorder %s1610_s1, %s1347_s25  ;;  %s21_s22 = int_to_ptr.vmem [resolvable:$true] %s20_s22 }
   0x3   :  { %p1351_p1 = scmp.lt.u32.totalorder %s1347_s25, %s1610_s1 }
   0x5   :  { %p1353_p2 = pnand %p1351_p1, %p1348_p0 }
   0x7   :  { %1356 = shalt.err (!%p1353_p2)
}
   0x8   :  { %s1357_s30 = scalar_lea.vmem %s21_s22, 256  ;;  %p1362_p4 = scmp.lt.s32.totalorder %s21_s22, %s21_s22 }
   0x9   :  { %p1358_p3 = scmp.ne.s32.totalorder %s21_s22, %s1357_s30  ;;  %p1363_p5 = scmp.lt.s32.totalorder %s1357_s30, %s1357_s30 }
   0xb   :  { %p1364_p6 = por %p1363_p5, %p1362_p4 }
   0xd   :  { %p1365_p7 = pnand %p1364_p6, %p1358_p3 }
   0xf   :  { %1368 = shalt.err (!%p1365_p7)
}
  0x10   :  { %s1396_s7 = smov 128   ;;  %s1397_s8 = smov 8  }
  0x11   :  { %26 = dma.hbm_to_vmem [thread:$0]  %s1610_s1, 256, %s21_s22, [#allocation3], %s1396_s7, %s1396_s7, %s1397_s8  }
  0x12   :  { %1391 = dma.done.wait [#allocation3], 256  }
  0x13   :  { %1392 = vsyncadd [#allocation3], 4294967040  ;;  %v1398_v0 = vmov 0.0|0.0   ;;  %vm1399_vm0 = vmmov 0   ;;  %v1400_v1 = vmov 0.0   ;;  %v122_v2 = vld [vmem:[%s1611_s2] sm:$0xff] }
  0x14   :  { %1216 = vmatprep.subr.bf16.mxu1 %v1398_v0  ;;  %1213 = vmatprep.subr.bf16.mxu0 %v1398_v0  ;;  %v123_v3 = vld [vmem:[%s1611_s2 + $0x8] sm:$0xff]  ;;  %v39_v4 = vld [vmem:[#allocation2] sm:$0xff]  ;;  %v124_v7 = vld [vmem:[%s1611_s2 + $0x10] sm:$0xff]  ;;  %vm48_vm1 = vcmask 130048   ;;  %s1401_s20 = smov 64   ;;  %vm126_vm2 = vcmask 261120  }
  0x15   :  { %1111 = vmatprep.mubr.msk.f32.mxu0 %vm1399_vm0, %v1400_v1  ;;  %1122 = vmatprep.mubr.msk.f32.mxu1 %vm1399_vm0, %v1400_v1  ;;  %v1463_v5 = vpack.c.bf16 %v123_v3, %v122_v2  ;;  %v40_v6 = vld [vmem:[#allocation2 + $0x8] sm:$0xff]  ;;  %v125_v9 = vld [vmem:[%s1611_s2 + $0x18] sm:$0xff]  ;;  %v38_v11 = vld [vmem:[%s1609_s0] sm:$0xff]  ;;  %vm1012_vm3 = vcmask 24576  }
  0x16   :  { %v1214_v8 = vpack.c.bf16 %v40_v6, %v39_v4  ;;  %v1472_v10 = vpack.c.bf16 %v125_v9, %v124_v7  ;;  %v1041_v12 = vld [vmem:[%s1612_s3] ss:$0 sm:$0xff]  ;;  %s1402_s3 = smov 32  }
  0x17   :  { %1218 = vmatpush3.bf16.msra.mxu1 %v1463_v5 }
  0x18   :  { %1215 = vmatpush3.bf16.msra.mxu0 %v1214_v8  ;;  %1219 = vmatprep.subr.bf16.mxu1 %v1398_v0 }
  0x19   :  { %1222 = vmatprep.subr.bf16.mxu0 %v1398_v0 }
  0x1b   :  { %1112 = vmatmul.mubr.msk.f32.vlgmr.msra.gmra.mrb[0].mxu0 %vm48_vm1, %v38_v11  ;;  %1221 = vmatpush3.bf16.msra.mxu1 %v1472_v10 }
  0x1c   :  { %1224 = vmatpush3.bf16.msra.mxu0 %v1463_v5  ;;  %1133 = vmatprep.mubr.msk.f32.mxu0 %vm1399_vm0, %v1400_v1 }
  0x1d   :  { %1225 = vmatprep.subr.bf16.mxu0 %v1398_v0  ;;  %1228 = vmatprep.subr.bf16.mxu1 %v1398_v0 }
  0x1e   :  { %1123 = vmatmul.mubr.f32.vlgmr.msra.gmra.mrb[0].mxu1 %v1400_v1 }
  0x1f   :  { %1230 = vmatpush3.bf16.msra.mxu1 %v1463_v5  ;;  %1144 = vmatprep.mubr.msk.f32.mxu1 %vm1399_vm0, %v1400_v1 }
  0x20   :  { %1227 = vmatpush3.bf16.msra.mxu0 %v1472_v10  ;;  %1231 = vmatprep.subr.bf16.mxu1 %v1398_v0 }
  0x21   :  { %1234 = vmatprep.subr.bf16.mxu0 %v1398_v0 }
  0x23   :  { %1233 = vmatpush3.bf16.msra.mxu1 %v1472_v10 }
  0x24   :  { %1240 = vmatprep.subr.bf16.mxu1 %v1398_v0 }
  0xee   :  { %v118_v13 = vpop.f32.mrb[0].mxu0 }
  0xef   :  { %v1497_v14 = vadd.f32 %v1041_v12, %v118_v13  ;;  %v1113_v15 = vpop.f32.mrb[1].mxu0 }
  0xf1   :  { %v196_v16 = vpop.f32.mrb[0].mxu1  ;;  %v228_v33 = vrot.slane %v1497_v14, 1  ;;  %v329_v51 = vrot.slane %v1497_v14, 2  ;;  %v430_v8 = vrot.slane %v1497_v14, 3 }
  0xf2   :  { %v197_v17 = vadd.f32 %v196_v16, %v1497_v14  ;;  %v1124_v18 = vpop.f32.mrb[1].mxu1 }
  0xf4   :  { %1279 = vtanh.f32 %v197_v17  ;;  %v1043_v20 = vmul.f32 -1.442695, %v197_v17 }
  0xf6   :  { %1281 = vpow2.f32 %v1043_v20 }
  0xfe   :  { %v1280_v19 = vpop.eup %1279 }
  0xff   :  { %209 = vrot.lane.b32.xlu0 %v1280_v19, %s1401_s20 }
 0x100   :  { %v1282_v21 = vpop.eup %1281 }
 0x101   :  { %v203_v22 = vadd.f32 1.0, %v1282_v21 }
 0x103   :  { %1283 = vrcp.f32 %v203_v22 }
 0x10d   :  { %v1284_v23 = vpop.eup %1283 }
 0x10e   :  { %v207_v26 = vmul.f32 0.0, %v1284_v23 }
 0x171   :  { %v210_v24 = vpop.permute.xlu0 %209 }
 0x172   :  { %v212_v25 = vmul.f32 %v1284_v23, %v210_v24 }
 0x174   :  { %214 = vrot.lane.b32.xlu0 %v212_v25, %s1402_s3 }
 0x1e6   :  { %v215_v27 = vpop.permute.xlu0 %214 }
 0x1e7   :  { %v217_v28 = vadd.f32 %v215_v27, %v207_v26 }
 0x1e9   :  { %1285 = vtanh.f32 %v217_v28 }
 0x1f3   :  { %v1286_v29 = vpop.eup %1285 }
 0x1f4   :  { %220 = vrot.lane.b32.xlu1 %v1286_v29, %s1401_s20 }
 0x266   :  { %v221_v30 = vpop.permute.xlu1 %220 }
 0x267   :  { %v223_v31 = vmul.f32 %v1284_v23, %v221_v30 }
 0x269   :  { %225 = vrot.lane.b32.xlu1 %v223_v31, %s1402_s3 }
 0x2db   :  { %v226_v32 = vpop.permute.xlu1 %225 }
 0x2dc   :  { %1134 = vmatmul.mubr.msk.f32.vlgmr.msra.gmra.mrb[2].mxu0 %vm126_vm2, %v226_v32 }
 0x2dd   :  { %1236 = vmatpush3.bf16.msra.mxu0 %v1463_v5  ;;  %1155 = vmatprep.mubr.msk.f32.mxu0 %vm1399_vm0, %v1400_v1 }
 0x2de   :  { %1237 = vmatprep.subr.bf16.mxu0 %v1398_v0 }
 0x2e1   :  { %1239 = vmatpush3.bf16.msra.mxu0 %v1472_v10 }
 0x2e2   :  { %1246 = vmatprep.subr.bf16.mxu0 %v1398_v0 }
 0x3af   :  { %v298_v34 = vpop.f32.mrb[2].mxu0 }
 0x3b0   :  { %v299_v35 = vadd.f32 %v298_v34, %v228_v33  ;;  %v1135_v36 = vpop.f32.mrb[3].mxu0 }
 0x3b2   :  { %1287 = vtanh.f32 %v299_v35  ;;  %v1045_v38 = vmul.f32 -1.442695, %v299_v35 }
 0x3b4   :  { %1289 = vpow2.f32 %v1045_v38 }
 0x3bc   :  { %v1288_v37 = vpop.eup %1287 }
 0x3bd   :  { %311 = vrot.lane.b32.xlu0 %v1288_v37, %s1401_s20 }
 0x3be   :  { %v1290_v39 = vpop.eup %1289 }
 0x3bf   :  { %v305_v40 = vadd.f32 1.0, %v1290_v39 }
 0x3c1   :  { %1291 = vrcp.f32 %v305_v40 }
 0x3cb   :  { %v1292_v41 = vpop.eup %1291 }
 0x3cc   :  { %v309_v44 = vmul.f32 %v1292_v41, %v217_v28  ;;  %v531_v28 = vrot.slane %v1497_v14, 4 }
 0x42f   :  { %v312_v42 = vpop.permute.xlu0 %311 }
 0x430   :  { %v314_v43 = vmul.f32 %v1292_v41, %v312_v42 }
 0x432   :  { %316 = vrot.lane.b32.xlu1 %v314_v43, %s1402_s3 }
 0x4a4   :  { %v317_v45 = vpop.permute.xlu1 %316 }
 0x4a5   :  { %v319_v46 = vadd.f32 %v317_v45, %v309_v44 }
 0x4a7   :  { %1293 = vtanh.f32 %v319_v46 }
 0x4b1   :  { %v1294_v47 = vpop.eup %1293 }
 0x4b2   :  { %322 = vrot.lane.b32.xlu0 %v1294_v47, %s1401_s20 }
 0x524   :  { %v323_v48 = vpop.permute.xlu0 %322 }
 0x525   :  { %v325_v49 = vmul.f32 %v1292_v41, %v323_v48 }
 0x527   :  { %327 = vrot.lane.b32.xlu1 %v325_v49, %s1402_s3 }
 0x599   :  { %v328_v50 = vpop.permute.xlu1 %327 }
 0x59a   :  { %1145 = vmatmul.mubr.msk.f32.vlgmr.msra.gmra.mrb[2].mxu1 %vm126_vm2, %v328_v50 }
 0x59b   :  { %1242 = vmatpush3.bf16.msra.mxu1 %v1463_v5  ;;  %1166 = vmatprep.mubr.msk.f32.mxu1 %vm1399_vm0, %v1400_v1 }
 0x59c   :  { %1243 = vmatprep.subr.bf16.mxu1 %v1398_v0 }
 0x59f   :  { %1245 = vmatpush3.bf16.msra.mxu1 %v1472_v10 }
 0x5a0   :  { %1252 = vmatprep.subr.bf16.mxu1 %v1398_v0 }
 0x66d   :  { %v399_v52 = vpop.f32.mrb[2].mxu1 }
 0x66e   :  { %v400_v53 = vadd.f32 %v399_v52, %v329_v51  ;;  %v1146_v54 = vpop.f32.mrb[3].mxu1 }
 0x670   :  { %1295 = vtanh.f32 %v400_v53  ;;  %v1047_v56 = vmul.f32 -1.442695, %v400_v53 }
 0x672   :  { %1297 = vpow2.f32 %v1047_v56 }
 0x67a   :  { %v1296_v55 = vpop.eup %1295 }
 0x67b   :  { %412 = vrot.lane.b32.xlu0 %v1296_v55, %s1401_s20 }
 0x67c   :  { %v1298_v57 = vpop.eup %1297 }
 0x67d   :  { %v406_v58 = vadd.f32 1.0, %v1298_v57 }
 0x67f   :  { %1299 = vrcp.f32 %v406_v58 }
 0x689   :  { %v1300_v59 = vpop.eup %1299 }
 0x68a   :  { %v410_v62 = vmul.f32 %v1300_v59, %v319_v46  ;;  %v632_v46 = vrot.slane %v1497_v14, 5 }
 0x6ed   :  { %v413_v60 = vpop.permute.xlu0 %412 }
 0x6ee   :  { %v415_v61 = vmul.f32 %v1300_v59, %v413_v60 }
 0x6f0   :  { %417 = vrot.lane.b32.xlu1 %v415_v61, %s1402_s3 }
 0x762   :  { %v418_v63 = vpop.permute.xlu1 %417 }
 0x763   :  { %v420_v2 = vadd.f32 %v418_v63, %v410_v62  ;;  %v733_v62 = vrot.slane %v1497_v14, 6 }
 0x765   :  { %1301 = vtanh.f32 %v420_v2 }
 0x76f   :  { %v1302_v3 = vpop.eup %1301 }
 0x770   :  { %423 = vrot.lane.b32.xlu0 %v1302_v3, %s1401_s20 }
 0x7e2   :  { %v424_v4 = vpop.permute.xlu0 %423 }
 0x7e3   :  { %v426_v6 = vmul.f32 %v1300_v59, %v424_v4 }
 0x7e5   :  { %428 = vrot.lane.b32.xlu1 %v426_v6, %s1402_s3 }
 0x857   :  { %v429_v7 = vpop.permute.xlu1 %428 }
 0x858   :  { %1156 = vmatmul.mubr.msk.f32.vlgmr.msra.gmra.mrb[4].mxu0 %vm126_vm2, %v429_v7 }
 0x859   :  { %1248 = vmatpush3.bf16.msra.mxu0 %v1463_v5  ;;  %1177 = vmatprep.mubr.msk.f32.mxu0 %vm1399_vm0, %v1400_v1 }
 0x85a   :  { %1249 = vmatprep.subr.bf16.mxu0 %v1398_v0 }
 0x85d   :  { %1251 = vmatpush3.bf16.msra.mxu0 %v1472_v10 }
 0x85e   :  { %1258 = vmatprep.subr.bf16.mxu0 %v1398_v0 }
 0x92b   :  { %v500_v9 = vpop.f32.mrb[4].mxu0 }
 0x92c   :  { %v501_v11 = vadd.f32 %v500_v9, %v430_v8  ;;  %v1157_v12 = vpop.f32.mrb[5].mxu0 }
 0x92e   :  { %1303 = vtanh.f32 %v501_v11  ;;  %v1049_v15 = vmul.f32 -1.442695, %v501_v11 }
 0x930   :  { %1305 = vpow2.f32 %v1049_v15 }
 0x938   :  { %v1304_v13 = vpop.eup %1303 }
 0x939   :  { %513 = vrot.lane.b32.xlu0 %v1304_v13, %s1401_s20 }
 0x93a   :  { %v1306_v16 = vpop.eup %1305 }
 0x93b   :  { %v507_v17 = vadd.f32 1.0, %v1306_v16 }
 0x93d   :  { %1307 = vrcp.f32 %v507_v17 }
 0x947   :  { %v1308_v18 = vpop.eup %1307 }
 0x948   :  { %v511_v21 = vmul.f32 %v1308_v18, %v420_v2 }
 0x9ab   :  { %v514_v19 = vpop.permute.xlu0 %513 }
 0x9ac   :  { %v516_v20 = vmul.f32 %v1308_v18, %v514_v19 }
 0x9ae   :  { %518 = vrot.lane.b32.xlu1 %v516_v20, %s1402_s3  ;;  %v834_v20 = vrot.slane %v1497_v14, 7 }
 0xa20   :  { %v519_v22 = vpop.permute.xlu1 %518 }
 0xa21   :  { %v521_v23 = vadd.f32 %v519_v22, %v511_v21 }
 0xa23   :  { %1309 = vtanh.f32 %v521_v23 }
 0xa2d   :  { %v1310_v24 = vpop.eup %1309 }
 0xa2e   :  { %524 = vrot.lane.b32.xlu0 %v1310_v24, %s1401_s20 }
 0xaa0   :  { %v525_v25 = vpop.permute.xlu0 %524 }
 0xaa1   :  { %v527_v26 = vmul.f32 %v1308_v18, %v525_v25 }
 0xaa3   :  { %529 = vrot.lane.b32.xlu1 %v527_v26, %s1402_s3 }
 0xb15   :  { %v530_v27 = vpop.permute.xlu1 %529 }
 0xb16   :  { %1167 = vmatmul.mubr.msk.f32.vlgmr.msra.gmra.mrb[4].mxu1 %vm126_vm2, %v530_v27 }
 0xb17   :  { %1254 = vmatpush3.bf16.msra.mxu1 %v1463_v5  ;;  %1188 = vmatprep.mubr.msk.f32.mxu1 %vm1399_vm0, %v1400_v1 }
 0xb18   :  { %1255 = vmatprep.subr.bf16.mxu1 %v1398_v0 }
 0xb1b   :  { %1257 = vmatpush3.bf16.msra.mxu1 %v1472_v10 }
 0xb1c   :  { %1264 = vmatprep.subr.bf16.mxu1 %v1398_v0 }
 0xbe9   :  { %v601_v29 = vpop.f32.mrb[4].mxu1 }
 0xbea   :  { %v602_v30 = vadd.f32 %v601_v29, %v531_v28  ;;  %v1168_v31 = vpop.f32.mrb[5].mxu1 }
 0xbec   :  { %1311 = vtanh.f32 %v602_v30  ;;  %v1051_v33 = vmul.f32 -1.442695, %v602_v30 }
 0xbee   :  { %1313 = vpow2.f32 %v1051_v33  ;;  %v932_v33 = vld [vmem:[%s1613_s4] sm:$0xff] }
 0xbf6   :  { %v1312_v32 = vpop.eup %1311 }
 0xbf7   :  { %614 = vrot.lane.b32.xlu0 %v1312_v32, %s1401_s20 }
 0xbf8   :  { %v1314_v34 = vpop.eup %1313 }
 0xbf9   :  { %v608_v35 = vadd.f32 1.0, %v1314_v34  ;;  %v933_v34 = vld [vmem:[%s1613_s4 + $0x8] sm:$0xff] }
 0xbfb   :  { %1315 = vrcp.f32 %v608_v35  ;;  %v934_v35 = vld [vmem:[%s1613_s4 + $0x10] sm:$0xff] }
 0xc05   :  { %v1316_v36 = vpop.eup %1315 }
 0xc06   :  { %v612_v39 = vmul.f32 %v1316_v36, %v521_v23 }
 0xc69   :  { %v615_v37 = vpop.permute.xlu0 %614 }
 0xc6a   :  { %v617_v38 = vmul.f32 %v1316_v36, %v615_v37  ;;  %v935_v37 = vld [vmem:[%s1613_s4 + $0x18] sm:$0xff]  ;;  %s1403_s4 = smov [#allocation5]  }
 0xc6c   :  { %619 = vrot.lane.b32.xlu1 %v617_v38, %s1402_s3  ;;  %v1268_v38 = vpack.c.bf16 %v935_v37, %v934_v35 }
 0xcde   :  { %v620_v40 = vpop.permute.xlu1 %619 }
 0xcdf   :  { %v622_v41 = vadd.f32 %v620_v40, %v612_v39 }
 0xce1   :  { %1317 = vtanh.f32 %v622_v41 }
 0xceb   :  { %v1318_v42 = vpop.eup %1317 }
 0xcec   :  { %625 = vrot.lane.b32.xlu0 %v1318_v42, %s1401_s20 }
 0xd5e   :  { %v626_v43 = vpop.permute.xlu0 %625 }
 0xd5f   :  { %v628_v44 = vmul.f32 %v1316_v36, %v626_v43  ;;  %v1265_v36 = vpack.c.bf16 %v933_v34, %v932_v33  ;;  %v936_v43 = vld [vmem:[%s1614_s5] sm:$0x1]  ;;  %s1032_s5 = sshll.u32 %s1403_s4, 4  ;;  %s1033_s5 = int_to_ptr.vmem [resolvable:$true] %s1032_s5 }
 0xd60   :  { %s1369_s7 = scalar_lea.vmem %s1033_s5, 16  ;;  %s1373_s8 = scalar_lea.vmem %s1033_s5, 32 }
 0xd61   :  { %630 = vrot.lane.b32.xlu1 %v628_v44, %s1402_s3  ;;  %p1370_p8 = scmp.ne.s32.totalorder %s1033_s5, %s1369_s7  ;;  %p1374_p9 = scmp.lt.s32.totalorder %s1033_s5, %s1033_s5 }
 0xd62   :  { %p1375_p10 = scmp.lt.s32.totalorder %s1373_s8, %s1369_s7 }
 0xd64   :  { %p1376_p11 = por %p1375_p10, %p1374_p9 }
 0xd66   :  { %p1377_p12 = pnand %p1376_p11, %p1370_p8 }
 0xdd3   :  { %v631_v45 = vpop.permute.xlu1 %630 }
 0xdd4   :  { %1178 = vmatmul.mubr.msk.f32.vlgmr.msra.gmra.mrb[6].mxu0 %vm126_vm2, %v631_v45 }
 0xdd5   :  { %1260 = vmatpush3.bf16.msra.mxu0 %v1463_v5  ;;  %1199 = vmatprep.mubr.msk.f32.mxu0 %vm1399_vm0, %v1400_v1 }
 0xdd6   :  { %1261 = vmatprep.subr.bf16.mxu0 %v1398_v0 }
 0xdd9   :  { %1263 = vmatpush3.bf16.msra.mxu0 %v1472_v10 }
 0xea7   :  { %v702_v47 = vpop.f32.mrb[6].mxu0 }
 0xea8   :  { %v703_v48 = vadd.f32 %v702_v47, %v632_v46  ;;  %v1179_v49 = vpop.f32.mrb[7].mxu0 }
 0xeaa   :  { %1319 = vtanh.f32 %v703_v48  ;;  %v1053_v51 = vmul.f32 -1.442695, %v703_v48 }
 0xeac   :  { %1321 = vpow2.f32 %v1053_v51 }
 0xeb4   :  { %v1320_v50 = vpop.eup %1319 }
 0xeb5   :  { %715 = vrot.lane.b32.xlu0 %v1320_v50, %s1401_s20 }
 0xeb6   :  { %v1322_v52 = vpop.eup %1321 }
 0xeb7   :  { %v709_v5 = vadd.f32 1.0, %v1322_v52 }
 0xeb9   :  { %1323 = vrcp.f32 %v709_v5 }
 0xec3   :  { %v1324_v53 = vpop.eup %1323 }
 0xec4   :  { %v713_v10 = vmul.f32 %v1324_v53, %v622_v41 }
 0xf27   :  { %v716_v54 = vpop.permute.xlu0 %715 }
 0xf28   :  { %v718_v55 = vmul.f32 %v1324_v53, %v716_v54 }
 0xf2a   :  { %720 = vrot.lane.b32.xlu1 %v718_v55, %s1402_s3 }
 0xf9c   :  { %v721_v56 = vpop.permute.xlu1 %720 }
 0xf9d   :  { %v723_v57 = vadd.f32 %v721_v56, %v713_v10 }
 0xf9f   :  { %1325 = vtanh.f32 %v723_v57 }
 0xfa9   :  { %v1326_v58 = vpop.eup %1325 }
 0xfaa   :  { %726 = vrot.lane.b32.xlu0 %v1326_v58, %s1401_s20 }
0x101c   :  { %v727_v59 = vpop.permute.xlu0 %726 }
0x101d   :  { %v729_v60 = vmul.f32 %v1324_v53, %v727_v59 }
0x101f   :  { %731 = vrot.lane.b32.xlu1 %v729_v60, %s1402_s3 }
0x1091   :  { %v732_v61 = vpop.permute.xlu1 %731 }
0x1092   :  { %1189 = vmatmul.mubr.msk.f32.vlgmr.msra.gmra.mrb[6].mxu1 %vm126_vm2, %v732_v61 }
0x1093   :  { %1210 = vmatprep.mubr.msk.f32.mxu1 %vm1399_vm0, %v1400_v1  ;;  %1266 = vmatpush3.bf16.msra.mxu1 %v1265_v36 }
0x1094   :  { %1267 = vmatprep.subr.bf16.mxu1 %v1398_v0 }
0x1097   :  { %1269 = vmatpush3.bf16.msra.mxu1 %v1268_v38 }
0x1165   :  { %v803_v63 = vpop.f32.mrb[6].mxu1 }
0x1166   :  { %v804_v2 = vadd.f32 %v803_v63, %v733_v62  ;;  %v1190_v3 = vpop.f32.mrb[7].mxu1 }
0x1168   :  { %1327 = vtanh.f32 %v804_v2  ;;  %v1055_v6 = vmul.f32 -1.442695, %v804_v2 }
0x116a   :  { %1329 = vpow2.f32 %v1055_v6 }
0x1172   :  { %v1328_v4 = vpop.eup %1327 }
0x1173   :  { %816 = vrot.lane.b32.xlu0 %v1328_v4, %s1401_s20 }
0x1174   :  { %v1330_v7 = vpop.eup %1329 }
0x1175   :  { %v810_v8 = vadd.f32 1.0, %v1330_v7 }
0x1177   :  { %1331 = vrcp.f32 %v810_v8 }
0x1181   :  { %v1332_v9 = vpop.eup %1331 }
0x1182   :  { %v814_v1 = vmul.f32 %v1332_v9, %v723_v57 }
0x11e5   :  { %v817_v11 = vpop.permute.xlu0 %816 }
0x11e6   :  { %v819_v12 = vmul.f32 %v1332_v9, %v817_v11 }
0x11e8   :  { %821 = vrot.lane.b32.xlu1 %v819_v12, %s1402_s3 }
0x125a   :  { %v822_v13 = vpop.permute.xlu1 %821 }
0x125b   :  { %v824_v15 = vadd.f32 %v822_v13, %v814_v1 }
0x125d   :  { %1333 = vtanh.f32 %v824_v15 }
0x1267   :  { %v1334_v16 = vpop.eup %1333 }
0x1268   :  { %827 = vrot.lane.b32.xlu0 %v1334_v16, %s1401_s20 }
0x12da   :  { %v828_v17 = vpop.permute.xlu0 %827 }
0x12db   :  { %v830_v18 = vmul.f32 %v1332_v9, %v828_v17 }
0x12dd   :  { %832 = vrot.lane.b32.xlu1 %v830_v18, %s1402_s3 }
0x134f   :  { %v833_v19 = vpop.permute.xlu1 %832 }
0x1350   :  { %1200 = vmatmul.mubr.msk.f32.vlgmr.msra.gmra.mrb[8].mxu0 %vm126_vm2, %v833_v19 }
0x1423   :  { %v904_v21 = vpop.f32.mrb[8].mxu0 }
0x1424   :  { %v905_v22 = vadd.f32 %v904_v21, %v834_v20  ;;  %v1201_v23 = vpop.f32.mrb[9].mxu0 }
0x1426   :  { %1335 = vtanh.f32 %v905_v22  ;;  %v1057_v25 = vmul.f32 -1.442695, %v905_v22 }
0x1428   :  { %1337 = vpow2.f32 %v1057_v25 }
0x1430   :  { %v1336_v24 = vpop.eup %1335 }
0x1431   :  { %917 = vrot.lane.b32.xlu0 %v1336_v24, %s1401_s20 }
0x1432   :  { %v1338_v26 = vpop.eup %1337 }
0x1433   :  { %v911_v27 = vadd.f32 1.0, %v1338_v26 }
0x1435   :  { %1339 = vrcp.f32 %v911_v27 }
0x143f   :  { %v1340_v28 = vpop.eup %1339 }
0x1440   :  { %v915_v31 = vmul.f32 %v1340_v28, %v824_v15 }
0x14a3   :  { %v918_v29 = vpop.permute.xlu0 %917 }
0x14a4   :  { %v920_v30 = vmul.f32 %v1340_v28, %v918_v29 }
0x14a6   :  { %922 = vrot.lane.b32.xlu1 %v920_v30, %s1402_s3 }
0x1518   :  { %v923_v32 = vpop.permute.xlu1 %922 }
0x1519   :  { %v925_v14 = vadd.f32 %v923_v32, %v915_v31 }
0x151b   :  { %1341 = vtanh.f32 %v925_v14 }
0x1525   :  { %v1342_v39 = vpop.eup %1341 }
0x1526   :  { %928 = vrot.lane.b32.xlu0 %v1342_v39, %s1401_s20 }
0x1598   :  { %v929_v40 = vpop.permute.xlu0 %928 }
0x1599   :  { %v931_v41 = vmul.f32 %v1340_v28, %v929_v40 }
0x159b   :  { %938 = vrot.lane.b32.xlu1 %v931_v41, %s1402_s3 }
0x160d   :  { %v939_v42 = vpop.permute.xlu1 %938 }
0x160e   :  { %1211 = vmatmul.mubr.msk.f32.vlgmr.msra.gmra.mrb[8].mxu1 %vm126_vm2, %v939_v42 }
0x16e1   :  { %v1008_v44 = vpop.f32.mrb[8].mxu1 }
0x16e2   :  { %v1009_v45 = vadd.f32 %v1008_v44, %v936_v43  ;;  %v1212_v46 = vpop.f32.mrb[9].mxu1 }
0x16e4   :  { %v1013_v0 = vsel %vm1012_vm3, %v1009_v45, -inf }
0x16e5   :  { %1014 = vmax.xlane.f32.xlu0 %v1013_v0 }
0x1772   :  { %v1015_v47 = vpop.xlane.xlu0 %1014 }
0x1773   :  { %v1016_v48 = vsub.f32 %v1009_v45, %v1015_v47 }
0x1775   :  { %v1017_v49 = vmul.f32 1.442695, %v1016_v48 }
0x1777   :  { %1343 = vpow2.f32 %v1017_v49 }
0x1781   :  { %v1344_v50 = vpop.eup %1343 }
0x1782   :  { %v1019_v51 = vsel %vm1012_vm3, %v1344_v50, 0.0 }
0x1783   :  { %1020 = vadd.xlane.f32.xlu1 %v1019_v51 }
0x1810   :  { %v1021_v52 = vpop.xlane.xlu1 %1020 }
0x1811   :  { %1345 = vlog2.f32 %v1021_v52 }
0x181b   :  { %v1346_v5 = vpop.eup %1345 }
0x181c   :  { %v1023_v53 = vmul.f32 0.6931472, %v1346_v5 }
0x181e   :  { %v1024_v54 = vsub.f32 %v1016_v48, %v1023_v53 }
0x1820   :  { %1025 = vst.msk [vmem:[#allocation5] sm:$0x1] %vm1012_vm3, %v1024_v54 }
0x1821   :  { %1380 = shalt.err (!%p1377_p12)
}
0x1822   :  { %s1381_s11 = scalar_lea.hbm %s1615_s6, 16 }
0x1823   :  { %p1382_p13 = scmp.ne.s32.totalorder %s1615_s6, %s1381_s11  ;;  %p1385_p0 = scmp.lt.u32.totalorder %s1381_s11, %s1615_s6 }
0x1825   :  { %p1387_p1 = pnand %p1385_p0, %p1382_p13 }
0x1827   :  { %1390 = shalt.err (!%p1387_p1)
}
0x1828   :  { %1035 = dma.vmem_to_hbm [thread:$0]  %s1033_s5, 16, %s1615_s6, [#allocation4]  }
0x1829   :  { %1393 = dma.done.wait [#allocation4], 16  }
0x182a   :  { %1394 = vsyncadd [#allocation4], 4294967280 }
0x182b   :  { %1039 = vsyncpa [#allocation3], 1 }
0x182c   :  { %1040 = vsyncpa [#allocation4], 1 }

</bundles_post_ra>
